<compile_context>
chip_gen: v7x
topology: tpu7x:2x2x1
jax: 0.10.0
libtpu: 0.0.40
codegen_flags: <defaults>
</compile_context>

<pallas_src>
import math
import functools

import jax
import jax.numpy as jnp
from jax.experimental import pallas as pl
from jax.experimental.pallas import tpu as pltpu


_VMEM_LIMIT = 48 * 1024 * 1024   # leaves headroom even on v7x (64 MiB per TC)
_NEG_INF = -1000000000.0


# ---------------------------------------------------------------------------
# Stage 1: linear projection  y = x @ W_t + b   (W_t pre-transposed on host)
# ---------------------------------------------------------------------------
def _linear_kernel(x_ref, w_ref, b_ref, o_ref):
    o_ref[0] = (jnp.dot(x_ref[0], w_ref[...], preferred_element_type=jnp.float32)
                + b_ref[...]).astype(o_ref.dtype)


def _linear(x, w_t, b, *, block_s=256):
    B, S, D_in = x.shape
    D_out = w_t.shape[1]
    bs = min(S, block_s)
    if S % bs != 0:
        bs = S
    return pl.pallas_call(
        _linear_kernel,
        out_shape=jax.ShapeDtypeStruct((B, S, D_out), x.dtype),
        grid=(B, S // bs),
        in_specs=[
            pl.BlockSpec((1, bs, D_in), lambda b_, i: (b_, i, 0)),
            pl.BlockSpec((D_in, D_out), lambda b_, i: (0, 0)),
            pl.BlockSpec((1, D_out), lambda b_, i: (0, 0)),
        ],
        out_specs=pl.BlockSpec((1, bs, D_out), lambda b_, i: (b_, i, 0)),
        compiler_params=pltpu.CompilerParams(
            dimension_semantics=("parallel", "parallel"),
            vmem_limit_bytes=_VMEM_LIMIT),
    )(x, w_t, b)


# ---------------------------------------------------------------------------
# Stage 2: head-batched attention + fused output projection
# ---------------------------------------------------------------------------
def _attn_kernel(qh_ref, kh_ref, vh_ref, mask_ref, wo_ref, bo_ref, out_ref, *, scale):
    f32 = jnp.float32
    qh = qh_ref[0]                    # (H, TQ, d_k)
    kh = kh_ref[0]                    # (H, Skv, d_k)
    vh = vh_ref[0]                    # (H, Skv, d_k)
    cdt = qh.dtype                    # MXU operand dtype (bf16 when caller passes bf16)

    # Additive mask bias computed once and broadcast over heads (== mask.unsqueeze(1)).
    bias = jnp.where(mask_ref[0] == 0, _NEG_INF, 0.0).astype(f32)   # (TQ, Skv)

    # QK^T for all heads at once (f32 accumulation).
    scores = jnp.einsum('hqd,hkd->hqk', qh, kh,
                        preferred_element_type=f32) * scale
    scores = scores + bias[None, :, :]

    # Softmax in f32; divide replaced by the EUP reciprocal (frees VALU slots).
    m = jnp.max(scores, axis=-1, keepdims=True)
    p = jnp.exp(scores - m)
    denom = jnp.sum(p, axis=-1, keepdims=True)
    p = p * pl.reciprocal(denom, approx=True)

    # PV for all heads at once.
    o = jnp.einsum('hqk,hkd->hqd', p.astype(cdt), vh,
                   preferred_element_type=f32)                      # (H, TQ, d_k)

    # concat-over-heads + output projection, folded:
    #   concat(o) @ wo.T  ==  sum_h  o[h] @ wo.T[h*d_k:(h+1)*d_k, :]
    proj = jnp.einsum('hqd,hdn->hqn', o.astype(cdt), wo_ref[...],
                      preferred_element_type=f32)                   # (H, TQ, D)
    out = jnp.sum(proj, axis=0) + bo_ref[...]                       # (TQ, D)
    out_ref[0] = out.astype(out_ref.dtype)


def multi_head_attention(q, k, v, mask, params, heads, *, block_q=None):
    """Forward pass of the PyTorch MultiHeadAttention module.

    q, k, v : (B, S, D) activations (same dtype; pass bf16 on v6e/v7x for the fast path)
    mask    : (B, Sq, Skv); positions where mask == 0 are masked out
    params  : PyTorch-convention weights wq/wk/wv/wo (D_out, D_in) and biases b* (1, D)
    """
    B, Sq, D = q.shape
    Skv = k.shape[1]
    d_k = D // heads
    dt = q.dtype
    f32 = jnp.float32

    # Pre-transpose / pre-split the weights ONCE on the host -> no in-kernel .T.
    wq_t = jnp.asarray(params["wq"]).T.astype(dt)                         # (D, D)
    wk_t = jnp.asarray(params["wk"]).T.astype(dt)
    wv_t = jnp.asarray(params["wv"]).T.astype(dt)
    wo_h = jnp.asarray(params["wo"]).T.reshape(heads, d_k, D).astype(dt)  # (H, d_k, D)
    bq = jnp.asarray(params["bq"]).reshape(1, D).astype(f32)
    bk = jnp.asarray(params["bk"]).reshape(1, D).astype(f32)
    bv = jnp.asarray(params["bv"]).reshape(1, D).astype(f32)
    bo = jnp.asarray(params["bo"]).reshape(1, D).astype(f32)

    # Stage 1: full-width projections (full MXU width, lane-dense outputs).
    qp = _linear(q, wq_t, bq)
    kp = _linear(k, wk_t, bk)
    vp = _linear(v, wv_t, bv)

    # XLA-side layout plumbing: split heads out of the lane dim -> (B, H, S, d_k).
    qh = qp.reshape(B, Sq, heads, d_k).transpose(0, 2, 1, 3)
    kh = kp.reshape(B, Skv, heads, d_k).transpose(0, 2, 1, 3)
    vh = vp.reshape(B, Skv, heads, d_k).transpose(0, 2, 1, 3)

    # Query tiling: bounds VMEM at O(H*TQ*Skv) per step and feeds both v7x TCs.
    if block_q is None:
        block_q = min(Sq, 256)
    if Sq % block_q != 0:
        block_q = Sq
    n_q = Sq // block_q

    kernel = functools.partial(_attn_kernel, scale=1.0 / math.sqrt(d_k))

    return pl.pallas_call(
        kernel,
        out_shape=jax.ShapeDtypeStruct((B, Sq, D), dt),
        grid=(B, n_q),
        in_specs=[
            pl.BlockSpec((1, heads, block_q, d_k), lambda b_, i: (b_, 0, i, 0)),
            pl.BlockSpec((1, heads, Skv, d_k), lambda b_, i: (b_, 0, 0, 0)),
            pl.BlockSpec((1, heads, Skv, d_k), lambda b_, i: (b_, 0, 0, 0)),
            pl.BlockSpec((1, block_q, Skv), lambda b_, i: (b_, i, 0)),
            pl.BlockSpec((heads, d_k, D), lambda b_, i: (0, 0, 0)),
            pl.BlockSpec((1, D), lambda b_, i: (0, 0)),
        ],
        out_specs=pl.BlockSpec((1, block_q, D), lambda b_, i: (b_, i, 0)),
        compiler_params=pltpu.CompilerParams(
            dimension_semantics=("parallel", "parallel"),
            vmem_limit_bytes=_VMEM_LIMIT),
    )(qh, kh, vh, mask, wo_h, bo)


# ---------------------------------------------------------------------------
# Pure-JAX reference mirroring the PyTorch module
# ---------------------------------------------------------------------------
def ref_mha(q, k, v, mask, params, heads):
    B, S, D = q.shape
    d_k = D // heads
    qp = q @ params["wq"].T + params["bq"][0]
    kp = k @ params["wk"].T + params["bk"][0]
    vp = v @ params["wv"].T + params["bv"][0]
    qh = qp.reshape(B, S, heads, d_k).transpose(0, 2, 1, 3)
    kh = kp.reshape(B, S, heads, d_k).transpose(0, 2, 1, 3)
    vh = vp.reshape(B, S, heads, d_k).transpose(0, 2, 1, 3)
    scores = jnp.einsum("bhqd,bhkd->bhqk", qh, kh) / math.sqrt(d_k)
    scores = jnp.where(mask[:, None] == 0, _NEG_INF, scores)
    p = jax.nn.softmax(scores, axis=-1)
    o = jnp.einsum("bhqk,bhkd->bhqd", p, vh)
    concat = o.transpose(0, 2, 1, 3).reshape(B, S, D)
    return concat @ params["wo"].T + params["bo"][0]


def init_params(key, d_model):
    ks = jax.random.split(key, 8)
    bound = 1.0 / math.sqrt(d_model)

    def u(k, shape):
        return jax.random.uniform(k, shape, jnp.float32, -bound, bound)

    return {
        "wq": u(ks[0], (d_model, d_model)), "bq": u(ks[1], (1, d_model)),
        "wk": u(ks[2], (d_model, d_model)), "bk": u(ks[3], (1, d_model)),
        "wv": u(ks[4], (d_model, d_model)), "bv": u(ks[5], (1, d_model)),
        "wo": u(ks[6], (d_model, d_model)), "bo": u(ks[7], (1, d_model)),
    }


if __name__ == "__main__":
    B, S, D, H = 2, 8, 32, 4

    key = jax.random.PRNGKey(0)
    kq, kk, kv, kp = jax.random.split(key, 4)
    q = jax.random.normal(kq, (B, S, D), jnp.float32)
    k = jax.random.normal(kk, (B, S, D), jnp.float32)
    v = jax.random.normal(kv, (B, S, D), jnp.float32)

    # padding-style mask: batch 0 fully valid, batch 1 has last 2 keys masked
    valid_len = jnp.array([S, S - 2])
    key_ids = jnp.arange(S)[None, None, :]                   # (1, 1, S)
    mask = (key_ids < valid_len[:, None, None]).astype(jnp.float32)
    mask = jnp.broadcast_to(mask, (B, S, S))                  # (B, S, S)

    params = init_params(kp, D)

    # f32 path (exact weights): validate against the pure-JAX reference.
    out = multi_head_attention(q, k, v, mask, params, H)
    out = jax.block_until_ready(out)
    ref = ref_mha(q, k, v, mask, params, H)
    assert out.shape == (B, S, D)
    assert jnp.allclose(out, ref, rtol=2e-3, atol=2e-3), "mismatch vs reference (f32)"

    # bf16 fast path (native bf16 MXU on v6e/v7x): looser tolerance.
    out_bf16 = multi_head_attention(q.astype(jnp.bfloat16), k.astype(jnp.bfloat16),
                                    v.astype(jnp.bfloat16), mask, params, H)
    out_bf16 = jax.block_until_ready(out_bf16)
    assert out_bf16.dtype == jnp.bfloat16
    assert jnp.allclose(out_bf16.astype(jnp.float32), ref, rtol=1e-1, atol=1e-1), \
        "mismatch vs reference (bf16)"

    print("KERNEL_OK")
</pallas_src>

<mosaic_0001>
module attributes {stable_mosaic.version = 11 : i64} {
  func.func @_linear_kernel(%arg0: i32, %arg1: i32, %arg2: memref<1x8x32xf32, #tpu.memory_space<vmem>>, %arg3: memref<32x32xf32, #tpu.memory_space<vmem>>, %arg4: memref<1x32xf32, #tpu.memory_space<vmem>>, %arg5: memref<1x8x32xf32, #tpu.memory_space<vmem>>) attributes {dimension_semantics = [#tpu.dimension_semantics<parallel>, #tpu.dimension_semantics<parallel>], iteration_bounds = array<i64: 2, 1>, scalar_prefetch = 0 : i64, scratch_operands = 0 : i64, tpu.core_type = #tpu.core_type<tc>, window_params = [{transform_indices = @transform_0, window_bounds = array<i64: 1, 8, 32>}, {pipeline_mode = #tpu.pipeline_mode<synchronous>, transform_indices = @transform_1, window_bounds = array<i64: 32, 32>}, {pipeline_mode = #tpu.pipeline_mode<synchronous>, transform_indices = @transform_2, window_bounds = array<i64: 1, 32>}, {transform_indices = @transform_3, window_bounds = array<i64: 1, 8, 32>}]} {
    %c0 = arith.constant 0 : index
    %c0_0 = arith.constant 0 : index
    %c0_1 = arith.constant 0 : index
    %0 = vector.load %arg2[%c0, %c0_0, %c0_1] : memref<1x8x32xf32, #tpu.memory_space<vmem>>, vector<1x8x32xf32>
    %1 = vector.shape_cast %0 : vector<1x8x32xf32> to vector<8x32xf32>
    %c0_2 = arith.constant 0 : index
    %c0_3 = arith.constant 0 : index
    %2 = vector.load %arg3[%c0_2, %c0_3] : memref<32x32xf32, #tpu.memory_space<vmem>>, vector<32x32xf32>
    %cst = arith.constant dense<0.000000e+00> : vector<8x32xf32>
    %3 = tpu.matmul %1, %2, %cst {dimension_numbers = #tpu.dot_dimension_numbers<[1], [0], [0], [1], [0, 0, 1, 1], [], []>} : vector<8x32xf32>, vector<32x32xf32>, vector<8x32xf32> -> vector<8x32xf32>
    %c0_4 = arith.constant 0 : index
    %c0_5 = arith.constant 0 : index
    %4 = vector.load %arg4[%c0_4, %c0_5] : memref<1x32xf32, #tpu.memory_space<vmem>>, vector<1x32xf32>
    %5 = vector.broadcast %4 : vector<1x32xf32> to vector<8x32xf32>
    %6 = arith.addf %3, %5 : vector<8x32xf32>
    %c0_6 = arith.constant 0 : index
    %c0_7 = arith.constant 0 : index
    %c0_8 = arith.constant 0 : index
    %7 = vector.load %arg5[%c0_6, %c0_7, %c0_8] : memref<1x8x32xf32, #tpu.memory_space<vmem>>, vector<1x8x32xf32>
    %8 = vector.shape_cast %7 : vector<1x8x32xf32> to vector<8x32xf32>
    %9 = vector.shape_cast %6 : vector<8x32xf32> to vector<1x8x32xf32>
    tpu.vector_store %arg5[%c0_6, %c0_7, %c0_8], %9 {strides = array<i32>} : memref<1x8x32xf32, #tpu.memory_space<vmem>>, vector<1x8x32xf32>,
    return
  }
  func.func @transform_0(%arg0: i32, %arg1: i32) -> (i32, i32, i32) {
    %c0_i32 = arith.constant 0 : i32
    %c0_i32_0 = arith.constant 0 : i32
    return %arg0, %arg1, %c0_i32 : i32, i32, i32
  }
  func.func @transform_1(%arg0: i32, %arg1: i32) -> (i32, i32) {
    %c0_i32 = arith.constant 0 : i32
    %c0_i32_0 = arith.constant 0 : i32
    %c0_i32_1 = arith.constant 0 : i32
    return %c0_i32, %c0_i32_0 : i32, i32
  }
  func.func @transform_2(%arg0: i32, %arg1: i32) -> (i32, i32) {
    %c0_i32 = arith.constant 0 : i32
    %c0_i32_0 = arith.constant 0 : i32
    %c0_i32_1 = arith.constant 0 : i32
    return %c0_i32, %c0_i32_0 : i32, i32
  }
  func.func @transform_3(%arg0: i32, %arg1: i32) -> (i32, i32, i32) {
    %c0_i32 = arith.constant 0 : i32
    %c0_i32_0 = arith.constant 0 : i32
    return %arg0, %arg1, %c0_i32 : i32, i32, i32
  }
}

</mosaic_0001>

<bundles_post_ra>
// kernel: tpu_custom_call.1
= control target key start
LH: loop header
LB: loop body
LE: loop exit
PB: predicated region body
PF: predicated region fallthrough
CT: control target
= control target key end

     0   :  { %8 = vsyncpa [#allocation3], 0  ;;  %s918_s0 = inlined_call_operand.hbm [shape: f32[2,8,32], index: 0, kind: input, shape index: {}]   ;;  %s919_s1 = inlined_call_operand.hbm [shape: f32[32,32], index: 1, kind: input, shape index: {}]   ;;  %s920_s2 = inlined_call_operand.vmem [shape: f32[1,32], index: 2, kind: input, shape index: {}]   ;;  %s921_s3 = inlined_call_operand.hbm [shape: f32[2,8,32], index: 3, kind: output, shape index: {}]  }
   0x1   :  { %10 = vsyncpa [#allocation3 + $0x1], 0 }
   0x2   :  { %11 = vsyncpa [#allocation6], 0 }
   0x3   :  { %12 = vsyncpa [#allocation4], 0 }
   0x4   :  { %14 = vsyncpa [#allocation4 + $0x1], 0  ;;  %s701_s12 = smov 0   ;;  %s703_s13 = smov 0  }
   0x5   :  { %s705_s14 = smov 0   ;;  %s707_s15 = smov 0  }
   0x6   :  { %s709_s16 = smov 0   ;;  %s711_s17 = smov 0  }
   0x7 LB: > { %s410_s18 = sadd.s32 4294967295, %s671_s17   ;;  %s411_s19 = sadd.s32 4294967294, %s671_s17   ;;  %s671_s17 = sphi %s711_s17, %s20_s17   ;;  %s667_s16 = sphi %s709_s16, %s945_s16   ;;  %s663_s15 = sphi %s707_s15, %s944_s15   ;;  %s659_s14 = sphi %s705_s14, %s943_s14   ;;  %s655_s13 = sphi %s703_s13, %s942_s13   ;;  %s651_s12 = sphi %s701_s12, %s941_s12  }
   0x8   : > { %p54_p0 = scmp.ne.s32.totalorder %s655_s13, %s651_s12  ;;  %p735_p1 = scmp.eq.s32.totalorder %s410_s18, 0 }
   0x9   : > { %p739_p2 = scmp.eq.s32.totalorder %s410_s18, 1  ;;  %p128_p3 = scmp.eq.s32.totalorder %s411_s19, 1 }
   0xa   : > { %s926_s20 = scalar_select %p735_p1, 1, 0 }
   0xb   : > { %s927_s21 = scalar_select %p739_p2, 1, 0 }
   0xc   : > { %p745_p4 = por %p735_p1, %p54_p0  ;;  %p412_p5 = scmp.ge.s32.totalorder %s671_s17, 1 }
   0xd   : > { %p750_p6 = por %p128_p3, %p54_p0  ;;  %p135_p7 = scmp.lt.s32.totalorder %s671_s17, 3 }
   0xe   : > { %s928_s22 = scalar_select %p745_p4, 1, 0 }
   0xf   : > { %s929_s23 = scalar_select %p750_p6, 1, 0 }
  0x10   : > { %p755_p8 = pnand %p412_p5, %p135_p7  ;;  %s673_s25 = smov [#allocation5]  }
  0x11   : > { %s147_s26 = sshll.u32 %s673_s25, 4  ;;  %s32_s28 = sadd.s32 1, %s667_s16  ;;  %s148_s26 = int_to_ptr.vmem [resolvable:$true] %s147_s26 }
  0x12   : > { %s930_s24 = scalar_select %p755_p8, 1, 0 }
  0x13   : > { %p457_p9 = pneg %p755_p8  ;;  %s527_s4 = scalar_lea.hbm %s919_s1, 512 }
  0x14   : > { %p528_p12 = scmp.ne.s32.totalorder %s919_s1, %s527_s4  ;;  %p534_p5 = scmp.lt.u32.totalorder %s527_s4, %s919_s1 }
  0x15   : > { %p764_p11 = pnand %p457_p9, %p735_p1 }
  0x17   : > { %p529_p13 = pneg %p764_p11 }
  0x19   : > { %p530_p0 = pnand %p529_p13, %p528_p12 }
  0x1b   : > { %p531_p3 = pneg %p530_p0 }
  0x1d   : > { %p536_p7 = pnand %p534_p5, %p531_p3 }
  0x1f   : > { %539 = shalt.err (!%p536_p7)
}
  0x20   : > { %s540_s9 = scalar_lea.vmem %s148_s26, 512  ;;  %p548_p1 = scmp.lt.s32.totalorder %s148_s26, %s148_s26 }
  0x21   : > { %p541_p9 = scmp.ne.s32.totalorder %s148_s26, %s540_s9  ;;  %p549_p4 = scmp.lt.s32.totalorder %s540_s9, %s540_s9 }
  0x23   : > { %p543_p10 = pnand %p541_p9, %p529_p13  ;;  %p550_p8 = por %p549_p4, %p548_p1 }
  0x25   : > { %p544_p6 = pneg %p543_p10 }
  0x27   : > { %p551_p2 = pnand %p550_p8, %p544_p6 }
  0x29   : > { %554 = shalt.err (!%p551_p2)
}
  0x2a   : > { %s674_s10 = smov 128   ;;  %s675_s11 = smov 8  }
  0x2b   : > { %460 = dma.hbm_to_vmem [thread:$0]  (!%p764_p11), %s919_s1, 512, %s148_s26, [#allocation6], %s674_s10, %s674_s10, %s675_s11  }
  0x2c   : > { %p34_p1 = scmp.ge.s32.totalorder %s32_s28, 2  ;;  %s41_s25 = sadd.s32 1, %s659_s14 }
  0x2d   : > { %p48_p2 = scmp.ne.s32.totalorder %s659_s14, %s655_s13  ;;  %p49_p4 = scmp.eq.s32.totalorder %s671_s17, 0 }
  0x2e   : > { %s947_s28 = smov (%p34_p1, %s32_s28), 0  ;;  %p933_p8 = scmp.ne.s32.totalorder %s927_s21, 0 }
  0x2f   : > { %p791_p6 = por %p49_p4, %p48_p2  ;;  %s36_s27 = ssub.s32 %s667_s16, %s947_s28 }
  0x30   : > { %p797_p10 = por %p933_p8, %p48_p2  ;;  %p470_p12 = scmp.lt.s32.totalorder %s671_s17, 2 }
  0x31   : > { %p39_p11 = scmp.eq.s32.totalorder %s36_s27, 0  ;;  %s164_s26 = sand.u32 1, %s659_s14  }
  0x32   : > { %s415_s4 = sshll.u32 %s164_s26, 3  ;;  %s416_s6 = sshll.u32 %s667_s16, 7 }
  0x33   : > { %s806_s5 = scalar_select %p39_p11, %s659_s14, %s41_s25  }
  0x34   : > { %s812_s9 = scalar_lea.hbm %s918_s0, %s416_s6  ;;  %s168_s21 = scalar_lea.vmem [#allocation2], %s415_s4 }
  0x35   : > { %s176_s10 = sshll.u32 %s168_s21, 4  ;;  %p818_p13 = pnand %p470_p12, %p791_p6  ;;  %s814_s10 = int_to_ptr.vmem [resolvable:$true] %s176_s10 }
  0x36   : > { %s165_s18 = scalar_lea.sflag [#allocation3], %s164_s26  ;;  %s555_s19 = scalar_lea.hbm %s812_s9, 128 }
  0x37   : > { %p556_p0 = scmp.ne.s32.totalorder %s812_s9, %s555_s19  ;;  %p557_p3 = pneg %p818_p13 }
  0x38   : > { %s560_s4 = scalar_lea.hbm %s918_s0, 256  ;;  %p561_p9 = scmp.lt.u32.totalorder %s812_s9, %s918_s0 }
  0x39   : > { %p558_p5 = pnand %p557_p3, %p556_p0  ;;  %p562_p1 = scmp.lt.u32.totalorder %s560_s4, %s555_s19 }
  0x3a   : > { %p564_p4 = scmp.lt.u32.totalorder %s555_s19, %s812_s9 }
  0x3b   : > { %p559_p7 = pneg %p558_p5  ;;  %p563_p2 = por %p562_p1, %p561_p9 }
  0x3d   : > { %p565_p6 = por %p564_p4, %p563_p2 }
  0x3f   : > { %p566_p8 = pnand %p565_p6, %p559_p7 }
  0x41   : > { %569 = shalt.err (!%p566_p8)
}
  0x42   : > { %s570_s26 = scalar_lea.vmem %s814_s10, 128  ;;  %s676_s7 = smov [#allocation2]  }
  0x43   : > { %p571_p12 = scmp.ne.s32.totalorder %s814_s10, %s570_s26  ;;  %s575_s8 = sshll.u32 %s676_s7, 4  ;;  %s576_s8 = int_to_ptr.vmem [resolvable:$false] %s575_s8 }
  0x44   : > { %s577_s21 = scalar_lea.vmem %s576_s8, 256  ;;  %p578_p5 = scmp.lt.s32.totalorder %s814_s10, %s576_s8 }
  0x45   : > { %p573_p11 = pnand %p571_p12, %p557_p3  ;;  %p579_p9 = scmp.lt.s32.totalorder %s577_s21, %s570_s26 }
  0x47   : > { %p574_p0 = pneg %p573_p11  ;;  %p580_p1 = por %p579_p9, %p578_p5 }
  0x49   : > { %p581_p2 = pnand %p580_p1, %p574_p0 }
  0x4b   : > { %584 = shalt.err (!%p581_p2)
}
  0x4c   : > { %464 = dma.hbm_to_vmem [thread:$0]  (!%p818_p13), %s812_s9, 128, %s814_s10, %s165_s18  }
  0x4d   : > { %p936_p7 = scmp.ne.s32.totalorder %s930_s24, 0 }
  0x4e   : > { %s850_s19 = sand.u32 (!%p936_p7), 1, %s655_s13   ;;  %p937_p3 = scmp.ne.s32.totalorder (!%p936_p7), %s928_s22, 0 }
  0x4f   : > { %185 = sbr.rel (%p936_p7) target bundleno = 329 (0x149), region = 32  ;;  %s418_s25 = sshll.u32 (!%p936_p7), %s850_s19, 3 }
  0x50   : > { %s188_s27 = scalar_lea.sflag (!%p936_p7), [#allocation3], %s850_s19  ;;  %s191_s4 = scalar_lea.vmem (!%p936_p7), [#allocation2], %s418_s25 }
  0x56   : > { %638 = dma.done.wait (%p937_p3), %s188_s27, 128  }
  0x57   : > { %640 = vsyncadd (%p937_p3), %s188_s27, 4294967168  ;;  %p938_p4 = scmp.ne.s32.totalorder %s926_s20, 0 }
  0x59   : > { %642 = dma.done.wait (%p938_p4), [#allocation6], 512  }
  0x5a   : > { %644 = vsyncadd (%p938_p4), [#allocation6], 4294966784  ;;  %v677_v0 = vmov 0.0|0.0   ;;  %vm678_vm0 = vmmov 0   ;;  %v679_v1 = vmov 0.0   ;;  %v219_v2 = vld [vmem:[#allocation5] sm:$0xff] }
  0x5b   : > { %443 = vmatprep.subr.bf16.mxu0 %v677_v0  ;;  %440 = vmatprep.mubr.msk.f32.mxu0 %vm678_vm0, %v679_v1  ;;  %v220_v3 = vld [vmem:[#allocation5 + $0x8] sm:$0xff]  ;;  %v221_v4 = vld [vmem:[#allocation5 + $0x10] sm:$0xff]  ;;  %v222_v6 = vld [vmem:[#allocation5 + $0x18] sm:$0xff]  ;;  %vm230_vm1 = vcmask 261120   ;;  %s424_s24 = sshll.u32 %s663_s15, 7  ;;  %s217_s9 = scalar_lea.vmem [#allocation7], %s418_s25 }
  0x5c   : > { %v444_v5 = vpack.c.bf16 %v220_v3, %v219_v2  ;;  %v447_v7 = vpack.c.bf16 %v222_v6, %v221_v4  ;;  %v218_v8 = vld [vmem:[%s191_s4] sm:$0xff]  ;;  %s320_s10 = sshll.u32 %s217_s9, 4  ;;  %s869_s29 = scalar_lea.hbm %s921_s3, %s424_s24  ;;  %s871_s10 = int_to_ptr.vmem [resolvable:$true] %s320_s10 }
  0x5d   : > { %v421_v9 = vld [vmem:[%s920_s2] ss:$0 sm:$0xff]  ;;  %s306_s6 = scalar_lea.sflag [#allocation4], %s850_s19  ;;  %s585_s26 = scalar_lea.vmem %s871_s10, 128 }
  0x5e   : > { %445 = vmatpush3.bf16.msra.mxu0 %v444_v5  ;;  %p586_p13 = scmp.ne.s32.totalorder %s871_s10, %s585_s26  ;;  %s680_s15 = smov [#allocation7]  }
  0x5f   : > { %446 = vmatprep.subr.bf16.mxu0 %v677_v0  ;;  %s589_s7 = sshll.u32 %s680_s15, 4  ;;  %s590_s7 = int_to_ptr.vmem [resolvable:$false] %s589_s7 }
  0x60   : > { %p587_p6 = pnand %p586_p13, %p797_p10  ;;  %s591_s8 = scalar_lea.vmem %s590_s7, 256 }
  0x61   : > { %p592_p12 = scmp.lt.s32.totalorder %s871_s10, %s590_s7  ;;  %p593_p11 = scmp.lt.s32.totalorder %s591_s8, %s585_s26 }
  0x62   : > { %448 = vmatpush3.bf16.msra.mxu0 %v447_v7  ;;  %p588_p8 = pneg %p587_p6 }
  0x63   : > { %p594_p0 = por %p593_p11, %p592_p12 }
  0x65   : > { %441 = vmatmul.mubr.msk.f32.vlgmr.msra.gmra.mrb[0].mxu0 %vm230_vm1, %v218_v8  ;;  %p595_p5 = pnand %p594_p0, %p588_p8 }
 0x138   : > { %v300_v10 = vpop.f32.mrb[0].mxu0 }
 0x139   : > { %v301_v11 = vadd.f32 %v421_v9, %v300_v10  ;;  %v442_v12 = vpop.f32.mrb[1].mxu0 }
 0x13b   : > { %304 = vst.msk [vmem:[%s217_s9] sm:$0xff] %vm230_vm1, %v301_v11 }
 0x13c   : > { %598 = shalt.err (!%p595_p5)
}
 0x13d   : > { %s599_s21 = scalar_lea.hbm %s869_s29, 128  ;;  %s603_s27 = scalar_lea.hbm %s921_s3, 256 }
 0x13e   : > { %p600_p9 = scmp.ne.s32.totalorder %s869_s29, %s599_s21  ;;  %p604_p7 = scmp.lt.u32.totalorder %s869_s29, %s921_s3 }
 0x13f   : > { %p605_p3 = scmp.lt.u32.totalorder %s603_s27, %s599_s21  ;;  %p607_p13 = scmp.lt.u32.totalorder %s599_s21, %s869_s29 }
 0x140   : > { %p601_p1 = pnand %p600_p9, %p797_p10 }
 0x141   : > { %p606_p4 = por %p605_p3, %p604_p7 }
 0x142   : > { %p602_p2 = pneg %p601_p1 }
 0x143   : > { %p608_p6 = por %p607_p13, %p606_p4 }
 0x145   : > { %p609_p8 = pnand %p608_p6, %p602_p2 }
 0x147   : > { %612 = shalt.err (!%p609_p8)
}
 0x148   : > { %455 = dma.vmem_to_hbm [thread:$0]  (%p797_p10), %s871_s10, 128, %s869_s29, %s306_s6  }
 0x149 PF: > { %s332_s22 = sand.u32 1, %s651_s12   ;;  %p939_p12 = scmp.ne.s32.totalorder %s929_s23, 0 }
 0x14a   : > { %p940_p11 = scmp.ge.s32.totalorder %s671_s17, 2  ;;  %s333_s24 = scalar_lea.sflag [#allocation4], %s332_s22 }
 0x14c   : > { %p466_p0 = pnand %p940_p11, %p939_p12 }
 0x14e   : > { %646 = dma.done.wait (!%p466_p0), %s333_s24, 128  }
 0x14f   : > { %648 = vsyncadd (!%p466_p0), %s333_s24, 4294967168  ;;  %s20_s17 = sadd.s32 1, %s671_s17   ;;  %s941_s12 = smov %s655_s13 }
 0x150   : > { %p17_p5 = scmp.ge.s32.totalorder %s20_s17, 4   ;;  %s942_s13 = smov %s659_s14 }
 0x151   : > { %s943_s14 = smov %s806_s5  ;;  %s944_s15 = smov %s667_s16 }
 0x152   : > { %s945_s16 = smov %s947_s28  ;;  %19 = sbr.rel (!%p17_p5) target bundleno = 7 (0x7), region = 81 }
 0x159   :  { %338 = vsyncpa [#allocation3], 1 }
 0x15a   :  { %340 = vsyncpa [#allocation3 + $0x1], 1 }
 0x15b   :  { %341 = vsyncpa [#allocation6], 1 }
 0x15c   :  { %342 = vsyncpa [#allocation4], 1 }
 0x15d   :  { %344 = vsyncpa [#allocation4 + $0x1], 1 }

</bundles_post_ra>
